<compile_context>
chip_gen: v5e
topology: v5e:2x2
jax: 0.10.0
libtpu: 0.0.40
codegen_flags: <defaults>
</compile_context>

<pallas_src>
import functools

import jax
import jax.numpy as jnp
from jax import lax
from jax.experimental import pallas as pl
from jax.experimental.pallas import tpu as pltpu

TEMPERATURE = 0.5
COS_EPS = 1e-8  # nn.CosineSimilarity default eps


def _nt_xent_kernel(zr_ref, zc_ref, out_ref, *, inv_t, batch, tm, tn):
    i = pl.program_id(0)
    j = pl.program_id(1)

    @pl.when(jnp.logical_and(i == 0, j == 0))
    def _init():
        out_ref[...] = jnp.zeros_like(out_ref)

    def normalize(z, extra_scale):
        # Cosine normalization: divide each row by max(||row||, eps).
        nsq = jnp.sum(z * z, axis=-1, keepdims=True)
        scale = lax.rsqrt(jnp.maximum(nsq, COS_EPS * COS_EPS)) * extra_scale
        return z * scale

    zr = normalize(zr_ref[...], inv_t)   # fold 1/temperature into the row operand
    zc = normalize(zc_ref[...], 1.0)

    # (tm, tn) tile of sim = (Zhat @ Zhat^T) / T; contraction on the last dim
    # of both operands -> no explicit transpose is materialized.
    g = lax.dot_general(zr, zc, (((1,), (1,)), ((), ())),
                        preferred_element_type=jnp.float32)

    # Block masks from global row/col indices. Diagonal blocks (b, b) are
    # "positive" (target 1); upper off-diagonal blocks (0,1),(0,2),(1,2) are
    # "negative" (target 0); lower blocks are not part of the loss.
    gr = i * tm + lax.broadcasted_iota(jnp.int32, (tm, tn), 0)
    gc = j * tn + lax.broadcasted_iota(jnp.int32, (tm, tn), 1)
    rb = (gr >= batch).astype(jnp.int32) + (gr >= 2 * batch).astype(jnp.int32)
    cb = (gc >= batch).astype(jnp.int32) + (gc >= 2 * batch).astype(jnp.int32)
    pos = (rb == cb).astype(jnp.float32)
    d = jnp.where(rb <= cb, g - pos, 0.0)

    # Single fused masked reduction per tile, accumulated into the resident
    # (1, 1) f32 VMEM output block.
    out_ref[...] = out_ref[...] + jnp.sum(d * d)


def _pick_tile(rows: int) -> int:
    if rows <= 512:
        return rows          # single tile; block == full array dims
    for t in (512, 256, 128, 64, 32, 16, 8):
        if rows % t == 0:
            return t
    return rows              # fall back to one full tile


def nt_xent_batch(z0, z1, z2, temperature: float = TEMPERATURE):
    """Pallas TPU implementation of NT_Xent_batch.forward. Returns a scalar."""
    B, D = z0.shape
    rows = 3 * B
    z = jnp.concatenate([z0, z1, z2], axis=0)   # (3B, D) stacked features
    tile = _pick_tile(rows)
    grid = (rows // tile, rows // tile)

    kernel = functools.partial(
        _nt_xent_kernel, inv_t=1.0 / float(temperature), batch=B, tm=tile, tn=tile)

    out = pl.pallas_call(
        kernel,
        out_shape=jax.ShapeDtypeStruct((1, 1), jnp.float32),
        grid_spec=pltpu.PrefetchScalarGridSpec(
            num_scalar_prefetch=0,
            grid=grid,
            in_specs=[
                pl.BlockSpec((tile, D), lambda i, j: (i, 0)),  # row tile of Z
                pl.BlockSpec((tile, D), lambda i, j: (j, 0)),  # col tile of Z
            ],
            out_specs=pl.BlockSpec((1, 1), lambda i, j: (0, 0)),
        ),
        compiler_params=pltpu.CompilerParams(
            dimension_semantics=("arbitrary", "arbitrary"),
            vmem_limit_bytes=32 * 1024 * 1024,
        ),
    )(z, z)
    return out[0, 0]


def nt_xent_batch_ref(z0, z1, z2, temperature: float = TEMPERATURE):
    """Pure-JAX reference mirroring the PyTorch forward exactly."""
    def cos_sim(a, b):
        na = jnp.sqrt(jnp.sum(a * a, axis=-1, keepdims=True))
        nb = jnp.sqrt(jnp.sum(b * b, axis=-1, keepdims=True))
        return (a @ b.T) / jnp.maximum(na * nb.T, COS_EPS) / temperature

    sim01, sim02, sim12 = cos_sim(z0, z1), cos_sim(z0, z2), cos_sim(z1, z2)
    sim00, sim11, sim22 = cos_sim(z0, z0), cos_sim(z1, z1), cos_sim(z2, z2)
    pos = jnp.concatenate([sim00, sim11, sim22], axis=0).reshape(-1)
    neg = jnp.concatenate([sim01, sim02, sim12], axis=0).reshape(-1)
    return jnp.sum((pos - 1.0) ** 2) + jnp.sum(neg ** 2)


if __name__ == "__main__":
    B, D = 8, 32
    key = jax.random.PRNGKey(0)
    k0, k1, k2 = jax.random.split(key, 3)
    z0 = jax.random.normal(k0, (B, D), dtype=jnp.float32)
    z1 = jax.random.normal(k1, (B, D), dtype=jnp.float32)
    z2 = jax.random.normal(k2, (B, D), dtype=jnp.float32)

    loss = jax.block_until_ready(nt_xent_batch(z0, z1, z2))
    loss_ref = jax.block_until_ready(nt_xent_batch_ref(z0, z1, z2))
    assert jnp.allclose(loss, loss_ref, rtol=1e-4, atol=1e-4), (loss, loss_ref)
    print("KERNEL_OK")
</pallas_src>

<mosaic_0001>
module attributes {stable_mosaic.version = 11 : i64} {
  func.func @_nt_xent_kernel(%arg0: i32, %arg1: i32, %arg2: memref<24x32xf32, #tpu.memory_space<vmem>>, %arg3: memref<24x32xf32, #tpu.memory_space<vmem>>, %arg4: memref<1x1xf32, #tpu.memory_space<vmem>>) attributes {dimension_semantics = [#tpu.dimension_semantics<arbitrary>, #tpu.dimension_semantics<arbitrary>], iteration_bounds = array<i64: 1, 1>, scalar_prefetch = 0 : i64, scratch_operands = 0 : i64, tpu.core_type = #tpu.core_type<tc>, window_params = [{transform_indices = @transform_0, window_bounds = array<i64: 24, 32>}, {transform_indices = @transform_1, window_bounds = array<i64: 24, 32>}, {pipeline_mode = #tpu.pipeline_mode<synchronous>, transform_indices = @transform_2, window_bounds = array<i64: 1, 1>}]} {
    %c0_i32 = arith.constant 0 : i32
    %0 = arith.cmpi eq, %arg0, %c0_i32 : i32
    %c0_i32_0 = arith.constant 0 : i32
    %1 = arith.cmpi eq, %arg1, %c0_i32_0 : i32
    %2 = arith.andi %0, %1 : i1
    %3 = arith.extui %2 : i1 to i32
    %c0_i32_1 = arith.constant 0 : i32
    %4 = arith.cmpi ne, %3, %c0_i32_1 : i32
    scf.if %4 {
      %cst_20 = arith.constant 0.000000e+00 : f32
      %66 = vector.broadcast %cst_20 : f32 to vector<1x1xf32>
      %c0_21 = arith.constant 0 : index
      %c0_22 = arith.constant 0 : index
      %67 = vector.load %arg4[%c0_21, %c0_22] : memref<1x1xf32, #tpu.memory_space<vmem>>, vector<1x1xf32>
      tpu.vector_store %arg4[%c0_21, %c0_22], %66 {strides = array<i32>} : memref<1x1xf32, #tpu.memory_space<vmem>>, vector<1x1xf32>,
    } else {
    }
    %c0 = arith.constant 0 : index
    %c0_2 = arith.constant 0 : index
    %5 = vector.load %arg2[%c0, %c0_2] : memref<24x32xf32, #tpu.memory_space<vmem>>, vector<24x32xf32>
    %6 = arith.mulf %5, %5 : vector<24x32xf32>
    %cst = arith.constant dense<0.000000e+00> : vector<24xf32>
    %7 = vector.multi_reduction <add>, %6, %cst [1] : vector<24x32xf32> to vector<24xf32>
    %8 = vector.shape_cast %7 : vector<24xf32> to vector<24x1xf32>
    %cst_3 = arith.constant 1.000000e-16 : f32
    %9 = vector.broadcast %cst_3 : f32 to vector<24x1xf32>
    %10 = arith.maximumf %8, %9 : vector<24x1xf32>
    %11 = math.rsqrt %10 : vector<24x1xf32>
    %cst_4 = arith.constant 2.000000e+00 : f32
    %12 = vector.broadcast %cst_4 : f32 to vector<24x1xf32>
    %13 = arith.mulf %11, %12 : vector<24x1xf32>
    %14 = vector.broadcast %13 : vector<24x1xf32> to vector<24x32xf32>
    %15 = arith.mulf %5, %14 : vector<24x32xf32>
    %c0_5 = arith.constant 0 : index
    %c0_6 = arith.constant 0 : index
    %16 = vector.load %arg3[%c0_5, %c0_6] : memref<24x32xf32, #tpu.memory_space<vmem>>, vector<24x32xf32>
    %17 = arith.mulf %16, %16 : vector<24x32xf32>
    %cst_7 = arith.constant dense<0.000000e+00> : vector<24xf32>
    %18 = vector.multi_reduction <add>, %17, %cst_7 [1] : vector<24x32xf32> to vector<24xf32>
    %19 = vector.shape_cast %18 : vector<24xf32> to vector<24x1xf32>
    %cst_8 = arith.constant 1.000000e-16 : f32
    %20 = vector.broadcast %cst_8 : f32 to vector<24x1xf32>
    %21 = arith.maximumf %19, %20 : vector<24x1xf32>
    %22 = math.rsqrt %21 : vector<24x1xf32>
    %cst_9 = arith.constant 1.000000e+00 : f32
    %23 = vector.broadcast %cst_9 : f32 to vector<24x1xf32>
    %24 = arith.mulf %22, %23 : vector<24x1xf32>
    %25 = vector.broadcast %24 : vector<24x1xf32> to vector<24x32xf32>
    %26 = arith.mulf %16, %25 : vector<24x32xf32>
    %cst_10 = arith.constant dense<0.000000e+00> : vector<24x24xf32>
    %27 = tpu.matmul %15, %26, %cst_10 {dimension_numbers = #tpu.dot_dimension_numbers<[1], [1], [0], [0], [0, 0, 1, 0], [], []>} : vector<24x32xf32>, vector<24x32xf32>, vector<24x24xf32> -> vector<24x24xf32>
    %c24_i32 = arith.constant 24 : i32
    %28 = arith.muli %arg0, %c24_i32 : i32
    %29 = tpu.iota {dimensions = array<i32: 0>} : vector<24x24xi32>
    %30 = vector.broadcast %28 : i32 to vector<24x24xi32>
    %31 = arith.addi %30, %29 : vector<24x24xi32>
    %c24_i32_11 = arith.constant 24 : i32
    %32 = arith.muli %arg1, %c24_i32_11 : i32
    %33 = tpu.iota {dimensions = array<i32: 1>} : vector<24x24xi32>
    %34 = vector.broadcast %32 : i32 to vector<24x24xi32>
    %35 = arith.addi %34, %33 : vector<24x24xi32>
    %c8_i32 = arith.constant 8 : i32
    %36 = vector.broadcast %c8_i32 : i32 to vector<24x24xi32>
    %37 = arith.cmpi sge, %31, %36 : vector<24x24xi32>
    %38 = arith.extui %37 : vector<24x24xi1> to vector<24x24xi32>
    %c16_i32 = arith.constant 16 : i32
    %39 = vector.broadcast %c16_i32 : i32 to vector<24x24xi32>
    %40 = arith.cmpi sge, %31, %39 : vector<24x24xi32>
    %41 = arith.extui %40 : vector<24x24xi1> to vector<24x24xi32>
    %42 = arith.addi %38, %41 : vector<24x24xi32>
    %c8_i32_12 = arith.constant 8 : i32
    %43 = vector.broadcast %c8_i32_12 : i32 to vector<24x24xi32>
    %44 = arith.cmpi sge, %35, %43 : vector<24x24xi32>
    %45 = arith.extui %44 : vector<24x24xi1> to vector<24x24xi32>
    %c16_i32_13 = arith.constant 16 : i32
    %46 = vector.broadcast %c16_i32_13 : i32 to vector<24x24xi32>
    %47 = arith.cmpi sge, %35, %46 : vector<24x24xi32>
    %48 = arith.extui %47 : vector<24x24xi1> to vector<24x24xi32>
    %49 = arith.addi %45, %48 : vector<24x24xi32>
    %50 = arith.cmpi eq, %42, %49 : vector<24x24xi32>
    %51 = arith.extui %50 : vector<24x24xi1> to vector<24x24xi32>
    %52 = arith.sitofp %51 : vector<24x24xi32> to vector<24x24xf32>
    %53 = arith.cmpi sle, %42, %49 : vector<24x24xi32>
    %54 = arith.subf %27, %52 : vector<24x24xf32>
    %cst_14 = arith.constant 0.000000e+00 : f32
    %55 = vector.broadcast %cst_14 : f32 to vector<24x24xf32>
    %56 = arith.select %53, %54, %55 : vector<24x24xi1>, vector<24x24xf32>
    %c0_15 = arith.constant 0 : index
    %c0_16 = arith.constant 0 : index
    %57 = vector.load %arg4[%c0_15, %c0_16] : memref<1x1xf32, #tpu.memory_space<vmem>>, vector<1x1xf32>
    %58 = arith.mulf %56, %56 : vector<24x24xf32>
    %59 = vector.shape_cast %58 : vector<24x24xf32> to vector<1x24x24xf32>
    %cst_17 = arith.constant dense<0.000000e+00> : vector<1xf32>
    %60 = vector.multi_reduction <add>, %59, %cst_17 [1, 2] : vector<1x24x24xf32> to vector<1xf32>
    %61 = vector.shape_cast %60 : vector<1xf32> to vector<1x1x1xf32>
    %62 = vector.extract %61[0, 0, 0] : f32 from vector<1x1x1xf32>
    %63 = vector.broadcast %62 : f32 to vector<1x1xf32>
    %64 = arith.addf %57, %63 : vector<1x1xf32>
    %c0_18 = arith.constant 0 : index
    %c0_19 = arith.constant 0 : index
    %65 = vector.load %arg4[%c0_18, %c0_19] : memref<1x1xf32, #tpu.memory_space<vmem>>, vector<1x1xf32>
    tpu.vector_store %arg4[%c0_18, %c0_19], %64 {strides = array<i32>} : memref<1x1xf32, #tpu.memory_space<vmem>>, vector<1x1xf32>,
    return
  }
  func.func @transform_0(%arg0: i32, %arg1: i32) -> (i32, i32) {
    %c0_i32 = arith.constant 0 : i32
    %c0_i32_0 = arith.constant 0 : i32
    return %arg0, %c0_i32 : i32, i32
  }
  func.func @transform_1(%arg0: i32, %arg1: i32) -> (i32, i32) {
    %c0_i32 = arith.constant 0 : i32
    %c0_i32_0 = arith.constant 0 : i32
    return %arg1, %c0_i32 : i32, i32
  }
  func.func @transform_2(%arg0: i32, %arg1: i32) -> (i32, i32) {
    %c0_i32 = arith.constant 0 : i32
    %c0_i32_0 = arith.constant 0 : i32
    %c0_i32_1 = arith.constant 0 : i32
    return %c0_i32, %c0_i32_0 : i32, i32
  }
}

</mosaic_0001>

<bundles_post_ra>
// kernel: tpu_custom_call.1
= control target key start
LH: loop header
LB: loop body
LE: loop exit
PB: predicated region body
PF: predicated region fallthrough
CT: control target
= control target key end

     0   :  { %7 = vsyncpa [#allocation3], 0  ;;  %s536_s0 = inlined_call_operand.hbm [shape: f32[24,32], index: 0, kind: input, shape index: {}]   ;;  %s537_s1 = inlined_call_operand.hbm [shape: f32[24,32], index: 1, kind: input, shape index: {}]   ;;  %s538_s2 = inlined_call_operand.hbm [shape: f32[1,1], index: 2, kind: output, shape index: {}]  }
   0x1   :  { %8 = vsyncpa [#allocation6], 0 }
   0x2   :  { %9 = vsyncpa [#allocation4], 0  ;;  %s14_s11 = sshll.u32 %s536_s0, 4  ;;  %s414_s12 = smov [#allocation2]   ;;  %s15_s11 = int_to_ptr.hbm [resolvable:$true] %s14_s11 }
   0x3   :  { %s16_s13 = sshll.u32 %s414_s12, 4  ;;  %s27_s16 = sshll.u32 %s537_s1, 4  ;;  %s17_s13 = int_to_ptr.vmem [resolvable:$true] %s16_s13  ;;  %s28_s16 = int_to_ptr.hbm [resolvable:$true] %s27_s16 }
   0x4   :  { %s415_s17 = smov 128   ;;  %s416_s18 = smov 8  }
   0x5   :  { %22 = dma.hbm_to_vmem [thread:$0]  %s15_s11, 384, %s17_s13, [#allocation3], %s415_s17, %s415_s17, %s416_s18  }
   0x6   :  { %s417_s19 = smov [#allocation5]  }
   0x7   :  { %s29_s20 = sshll.u32 %s417_s19, 4  ;;  %s30_s20 = int_to_ptr.vmem [resolvable:$true] %s29_s20 }
   0x8   :  { %35 = dma.hbm_to_vmem [thread:$0]  %s28_s16, 384, %s30_s20, [#allocation6], %s415_s17, %s415_s17, %s416_s18  }
   0x9   :  { %408 = dma.done.wait [#allocation3], 384  }
   0xa   :  { %409 = vsyncadd [#allocation3], 4294966912 }
   0xb   :  { %410 = dma.done.wait [#allocation6], 384  }
   0xc   :  { %411 = vsyncadd [#allocation6], 4294966912  ;;  %vm58_vm0 = vcmask 261120   ;;  %v442_v0 = vld [vmem:[#allocation5 + $0x10] sm:$0xff]  ;;  %v444_v1 = vld [vmem:[#allocation5] sm:$0xff]  ;;  %vm50_vm1 = vcmask 0  }
   0xd   :  { %v446_v2 = vld [vmem:[#allocation2 + $0x8] sm:$0xff]  ;;  %v112_v3 = vmul.f32 %v442_v0, %v442_v0  ;;  %v110_v4 = vmul.f32 %v444_v1, %v444_v1  ;;  %v454_v6 = vld [vmem:[#allocation5 + $0x8] sm:$0xff]  ;;  %v456_v7 = vld [vmem:[#allocation2 + $0x10] sm:$0xff]  ;;  %v418_v26 = vmov 0.0   ;;  %s420_s0 = smov [#allocation7]   ;;  %s284_s23 = sshll.u32 %s538_s2, 4  ;;  %s285_s23 = int_to_ptr.hbm [resolvable:$true] %s284_s23 }
   0xe   :  { %v56_v5 = vmul.f32 %v446_v2, %v446_v2  ;;  %v461_v11 = vld [vmem:[#allocation2] sm:$0xff]  ;;  %v111_v12 = vmul.f32 %v454_v6, %v454_v6  ;;  %v57_v13 = vmul.f32 %v456_v7, %v456_v7  ;;  %51 = vst.msk [vmem:[#allocation7] sm:$0x1] %vm50_vm1, %v418_v26  ;;  %s282_s1 = sshll.u32 %s420_s0, 4  ;;  %s283_s1 = int_to_ptr.vmem [resolvable:$true] %s282_s1 }
   0xf   :  { %v119_v8 = vsel %vm58_vm0, %v112_v3, 0.0  ;;  %v113_v9 = vsel %vm58_vm0, %v110_v4, 0.0  ;;  %v55_v14 = vmul.f32 %v461_v11, %v461_v11 }
  0x10   :  { %v62_v10 = vsel %vm58_vm0, %v56_v5, 0.0  ;;  %120 = vadd.xlane.f32.xlu0 %v119_v8  ;;  %114 = vadd.xlane.f32.xlu1 %v113_v9  ;;  %v116_v15 = vsel %vm58_vm0, %v111_v12, 0.0  ;;  %v65_v16 = vsel %vm58_vm0, %v57_v13, 0.0 }
  0x11   :  { %63 = vadd.xlane.f32.xlu2 %v62_v10  ;;  %v59_v17 = vsel %vm58_vm0, %v55_v14, 0.0 }
  0x18   :  { %117 = vadd.xlane.f32.xlu0 %v116_v15  ;;  %66 = vadd.xlane.f32.xlu1 %v65_v16 }
  0x19   :  { %60 = vadd.xlane.f32.xlu2 %v59_v17 }
  0x83   :  { %v121_v18 = vpop.xlane.xlu0 %120  ;;  %v115_v19 = vpop.xlane.xlu1 %114 }
  0x84   :  { %v124_v20 = vmax.f32 %v121_v18, 1e-16  ;;  %v122_v21 = vmax.f32 %v115_v19, 1e-16  ;;  %v64_v22 = vpop.xlane.xlu2 %63 }
  0x85   :  { %v472_v23 = vmax.f32 %v64_v22, 1e-16 }
  0x86   :  { %324 = vrsqrt.f32 %v124_v20  ;;  %vm151_vm3 = vweird.f32 %v124_v20  ;;  %vm131_vm6 = vweird.f32 %v122_v21 }
  0x87   :  { %326 = vrsqrt.f32 %v122_v21  ;;  %vm87_vm7 = vweird.f32 %v472_v23 }
  0x88   :  { %328 = vrsqrt.f32 %v472_v23 }
  0x8b   :  { %v118_v24 = vpop.xlane.xlu0 %117  ;;  %v67_v25 = vpop.xlane.xlu1 %66 }
  0x8c   :  { %v325_v27 = vpop.eup %324  ;;  %v123_v28 = vmax.f32 %v118_v24, 1e-16  ;;  %v70_v29 = vmax.f32 %v67_v25, 1e-16  ;;  %v61_v30 = vpop.xlane.xlu2 %60  ;;  %v419_v25 = vmov 0  }
  0x8d   :  { %v477_v31 = vpop.eup %326  ;;  %v146_v32 = vmul.f32 %v325_v27, %v124_v20  ;;  %v68_v33 = vmax.f32 %v61_v30, 1e-16  ;;  %vm152_vm2 = vweird.f32 %v325_v27 }
  0x8e   :  { %v479_v34 = vpop.eup %328  ;;  %v126_v35 = vmul.f32 %v477_v31, %v122_v21  ;;  %330 = vrsqrt.f32 %v123_v28  ;;  %vm153_vm4 = vmor %vm151_vm3, %vm152_vm2  ;;  %vm132_vm5 = vweird.f32 %v477_v31  ;;  %vm141_vm9 = vweird.f32 %v123_v28 }
  0x8f   :  { %v147_v36 = vmul.f32 %v325_v27, %v146_v32  ;;  %v82_v37 = vmul.f32 %v479_v34, %v472_v23  ;;  %332 = vrsqrt.f32 %v70_v29  ;;  %vm88_vm8 = vweird.f32 %v479_v34  ;;  %vm494_vm11 = vmor %vm131_vm6, %vm132_vm5 }
  0x90   :  { %334 = vrsqrt.f32 %v68_v33  ;;  %v127_v39 = vmul.f32 %v477_v31, %v126_v35  ;;  %vm77_vm13 = vweird.f32 %v68_v33  ;;  %vm502_vm14 = vmor %vm87_vm7, %vm88_vm8  ;;  %vm97_vm3 = vweird.f32 %v70_v29 }
  0x91   :  { %v148_v38 = vmul.f32 0.5, %v147_v36  ;;  %v83_v40 = vmul.f32 %v479_v34, %v82_v37 }
  0x92   :  { %v128_v45 = vmul.f32 0.5, %v127_v39 }
  0x93   :  { %v149_v41 = vsub.f32 1.5, %v148_v38  ;;  %v84_v43 = vmul.f32 0.5, %v83_v40 }
  0x94   :  { %v331_v42 = vpop.eup %330  ;;  %v129_v55 = vsub.f32 1.5, %v128_v45 }
  0x95   :  { %v333_v44 = vpop.eup %332  ;;  %v136_v46 = vmul.f32 %v331_v42, %v123_v28  ;;  %v150_v47 = vmul.f32 %v325_v27, %v149_v41  ;;  %v85_v52 = vsub.f32 1.5, %v84_v43  ;;  %vm142_vm10 = vweird.f32 %v331_v42 }
  0x96   :  { %v335_v48 = vpop.eup %334  ;;  %v92_v49 = vmul.f32 %v333_v44, %v70_v29  ;;  %vm98_vm12 = vweird.f32 %v333_v44  ;;  %v130_v8 = vmul.f32 %v477_v31, %v129_v55  ;;  %vm143_vm2 = vmor %vm141_vm9, %vm142_vm10 }
  0x97   :  { %v137_v50 = vmul.f32 %v331_v42, %v136_v46  ;;  %v72_v51 = vmul.f32 %v335_v48, %v68_v33  ;;  %v154_v54 = vsel %vm153_vm4, %v325_v27, %v150_v47  ;;  %v86_v63 = vmul.f32 %v479_v34, %v85_v52  ;;  %vm99_vm4 = vmor %vm97_vm3, %vm98_vm12 }
  0x98   :  { %v93_v53 = vmul.f32 %v333_v44, %v92_v49  ;;  %v157_v58 = vmul.f32 %v154_v54, %v442_v0  ;;  %vm78_vm15 = vweird.f32 %v335_v48  ;;  %v134_v15 = vsel %vm494_vm11, %v477_v31, %v130_v8 }
  0x99   :  { %v138_v56 = vmul.f32 0.5, %v137_v50  ;;  %v73_v57 = vmul.f32 %v335_v48, %v72_v51  ;;  %vm79_vm5 = vmor %vm77_vm13, %vm78_vm15  ;;  %v90_v14 = vsel %vm502_vm14, %v479_v34, %v86_v63  ;;  %vm258_vm11 = vcmask 195584  }
  0x9a   :  { %v94_v59 = vmul.f32 0.5, %v93_v53  ;;  %295 = vmatpush.xpose.msk.msra.mxu0 %vm58_vm0, %v157_v58  ;;  %309 = vmatpush.xpose.msk.msra.mxu1 %vm58_vm0, %v157_v58  ;;  %v102_v19 = vmul.f32 2.0, %v90_v14 }
  0x9b   :  { %v139_v60 = vsub.f32 1.5, %v138_v56  ;;  %v74_v61 = vmul.f32 0.5, %v73_v57  ;;  %310 = vmatpush.xpose.msk.msra.mxu2 %vm58_vm0, %v157_v58 }
  0x9c   :  { %v95_v0 = vsub.f32 1.5, %v94_v59  ;;  %v105_v22 = vmul.f32 %v102_v19, %v446_v2 }
  0x9d   :  { %v75_v4 = vsub.f32 1.5, %v74_v61  ;;  %v140_v5 = vmul.f32 %v331_v42, %v139_v60 }
  0x9e   :  { %v96_v9 = vmul.f32 %v333_v44, %v95_v0 }
  0x9f   :  { %v76_v10 = vmul.f32 %v335_v48, %v75_v4  ;;  %v144_v12 = vsel %vm143_vm2, %v331_v42, %v140_v5 }
  0xa0   :  { %v156_v13 = vmul.f32 %v144_v12, %v454_v6  ;;  %v100_v17 = vsel %vm99_vm4, %v333_v44, %v96_v9  ;;  %v155_v6 = vmul.f32 %v134_v15, %v444_v1  ;;  %v212_v1 = vlaneseq }
  0xa1   :  { %v80_v16 = vsel %vm79_vm5, %v335_v48, %v76_v10  ;;  %v103_v20 = vmul.f32 2.0, %v100_v17 }
  0xa2   :  { %296 = vmatpush.xpose.msk.msra.mxu0 %vm58_vm0, %v156_v13  ;;  %311 = vmatpush.xpose.msk.msra.mxu1 %vm58_vm0, %v156_v13  ;;  %v101_v18 = vmul.f32 2.0, %v80_v16  ;;  %v213_v24 = vand.u32 127, %v212_v1 }
  0xa3   :  { %312 = vmatpush.xpose.msk.msra.mxu2 %vm58_vm0, %v156_v13  ;;  %v106_v23 = vmul.f32 %v103_v20, %v456_v7 }
  0xa4   :  { %v104_v21 = vmul.f32 %v101_v18, %v461_v11  ;;  %vm231_vm6 = vcmp.ge.s32.totalorder %v213_v24, 8  ;;  %vm233_vm7 = vcmp.ge.s32.totalorder %v213_v24, 16 }
  0xa5   :  { %v232_v27 = vsel %vm231_vm6, 1, %v419_v25  ;;  %v234_v28 = vsel %vm233_vm7, 1, %v419_v25 }
  0xa6   :  { %297 = vmatpush.xpose.msk.msra.mxu0 %vm58_vm0, %v155_v6  ;;  %313 = vmatpush.xpose.msk.msra.mxu1 %vm58_vm0, %v155_v6  ;;  %v235_v29 = vadd.s32 %v234_v28, %v232_v27 }
  0xa7   :  { %314 = vmatpush.xpose.msk.msra.mxu2 %vm58_vm0, %v155_v6 }
  0xa8   :  { %vm301_vm8 = vcmp.eq.s32.totalorder %v235_v29, 0  ;;  %vm302_vm9 = vcmp.eq.s32.totalorder %v235_v29, 1  ;;  %vm307_vm10 = vcmp.ge.s32.totalorder %v235_v29, 1  ;;  %vm308_vm12 = vcmp.ge.s32.totalorder %v235_v29, 2 }
  0xa9   :  { %298 = vmatmul.msk.f32.vlgmr.msra.gmra.mxu0 %vm58_vm0, %v104_v21  ;;  %299 = vmatmul.msk.f32.vlgmr.msra.gmra.mxu1 %vm58_vm0, %v105_v22  ;;  %v304_v2 = vsel %vm301_vm8, 1.0, %v418_v26  ;;  %v305_v7 = vsel %vm302_vm9, 1.0, %v418_v26 }
  0xaa   :  { %300 = vmatmul.msk.f32.vlgmr.msra.gmra.mxu2 %vm58_vm0, %v106_v23  ;;  %vm303_vm0 = vcmp.eq.s32.totalorder %v235_v29, 2 }
  0xab   :  { %v306_v36 = vsel %vm303_vm0, 1.0, %v418_v26  ;;  %v254_v26 = vld [vmem:[#allocation7] sm:$0x1] }
 0x126   :  { %v193_v11 = vpop.f32.mrf.mxu0  ;;  %v196_v30 = vpop.f32.mrf.mxu1 }
 0x127   :  { %v248_v31 = vsub.f32 %v193_v11, %v304_v2  ;;  %v249_v32 = vsub.f32 %v196_v30, %v305_v7 }
 0x129   :  { %v252_v33 = vsel %vm307_vm10, %v249_v32, 0.0  ;;  %v255_v34 = vmul.f32 %v248_v31, %v248_v31 }
 0x12a   :  { %v256_v35 = vmul.f32 %v252_v33, %v252_v33 }
 0x12b   :  { %v259_v39 = vsel %vm258_vm11, %v255_v34, 0.0 }
 0x12c   :  { %v260_v40 = vsel %vm258_vm11, %v256_v35, 0.0 }
 0x12d   :  { %v199_v37 = vpop.f32.mrf.mxu2  ;;  %v261_v43 = vadd.f32 %v260_v40, %v259_v39 }
 0x12e   :  { %v250_v38 = vsub.f32 %v199_v37, %v306_v36 }
 0x130   :  { %v253_v41 = vsel %vm308_vm12, %v250_v38, 0.0 }
 0x131   :  { %v257_v42 = vmul.f32 %v253_v41, %v253_v41 }
 0x133   :  { %v262_v44 = vsel %vm258_vm11, %v257_v42, 0.0 }
 0x134   :  { %v263_v45 = vadd.f32 %v262_v44, %v261_v43 }
 0x136   :  { %264 = vadd.xlane.f32.xlu0 %v263_v45 }
 0x1a9   :  { %v265_v46 = vpop.xlane.xlu0 %264 }
 0x1aa   :  { %v266_v47 = vrot.slane %v265_v46, 4 }
 0x1ac   :  { %v267_v48 = vadd.f32 %v266_v47, %v265_v46 }
 0x1ae   :  { %v268_v49 = vrot.slane %v267_v48, 2 }
 0x1b0   :  { %v269_v50 = vadd.f32 %v268_v49, %v267_v48 }
 0x1b2   :  { %v270_v51 = vrot.slane %v269_v50, 1 }
 0x1b4   :  { %v271_v52 = vadd.f32 %v270_v51, %v269_v50 }
 0x1b6   :  { %315 = vpush %v271_v52 }
 0x1e7   :  { %s316_s24 = spop %315 }
 0x1e8   :  { %v273_v53 = vstv %s316_s24 }
 0x1e9   :  { %v274_v54 = vadd.f32 %v273_v53, %v254_v26 }
 0x1eb   :  { %276 = vst.msk [vmem:[#allocation7] sm:$0x1] %vm50_vm1, %v274_v54 }
 0x1ec   :  { %287 = dma.vmem_to_hbm [thread:$0]  %s283_s1, 16, %s285_s23, [#allocation4]  }
 0x1ed   :  { %412 = dma.done.wait [#allocation4], 16  }
 0x1ee   :  { %413 = vsyncadd [#allocation4], 4294967280 }
 0x1ef   :  { %292 = vsyncpa [#allocation3], 1 }
 0x1f0   :  { %293 = vsyncpa [#allocation6], 1 }
 0x1f1   :  { %294 = vsyncpa [#allocation4], 1 }

</bundles_post_ra>
